<compile_context>
chip_gen: v7x
topology: tpu7x:2x2x1
jax: 0.10.0
libtpu: 0.0.40
codegen_flags: <defaults>
</compile_context>

<pallas_src>
import functools

import jax
import jax.numpy as jnp
from jax import lax
from jax.experimental import pallas as pl
from jax.experimental.pallas import tpu as pltpu

_LANES = 128
_SUBLANES = 8
_MIN_TILE = _SUBLANES * _LANES   # 1024 elements
_CHUNK_ROWS = 512                # in-kernel compute chunk (256 KiB per f32 temp)


def _make_kernel(n_valid, tile_rows, chunk_rows, blocks_per_core, approx_recip):
    tile_elems = tile_rows * _LANES
    n_chunks = tile_rows // chunk_rows
    groups = chunk_rows // _SUBLANES

    def kernel(x_ref, t_ref, out_ref):
        c = pl.program_id(0)   # core slice (leading axis)
        i = pl.program_id(1)   # streaming block within the slice

        @pl.when(i == 0)
        def _():
            out_ref[...] = jnp.zeros_like(out_ref)

        blk = c * blocks_per_core + i          # logical block id
        base = blk * tile_elems                # flat index of this block's 1st element
        # Fully-valid block -> unmasked fast path. Ghost blocks (base >= n_valid)
        # and padded / partial trailing blocks fall to the masked path.
        is_full = base + tile_elems <= n_valid

        def psum(v):
            # (chunk_rows,128) -> (8,128) partial: pure sublane-group adds (VPU only).
            return jnp.sum(v.reshape(groups, _SUBLANES, _LANES), axis=0)

        def chunk_stats(ci, masked):
            start = ci * chunk_rows
            if not isinstance(start, int):
                start = pl.multiple_of(start, chunk_rows)
            x = x_ref[pl.ds(start, chunk_rows), :].astype(jnp.float32)
            t = t_ref[pl.ds(start, chunk_rows), :].astype(jnp.float32)

            if masked:
                row = lax.broadcasted_iota(jnp.int32, (chunk_rows, _LANES), 0)
                lane = lax.broadcasted_iota(jnp.int32, (chunk_rows, _LANES), 1)
                idx = base + (start + row) * _LANES + lane
                valid = idx < n_valid
                # Mask BEFORE transcendentals: garbage in pad/partial regions
                # must never reach exp/log.
                x = jnp.where(valid, x, 0.0)
                t = jnp.where(valid, t, 0.0)

            # Stable BCE-with-logits + sigmoid sharing one exp(-|x|) and one (1+e):
            #   bce = max(x,0) - x*t + log(1+e),  p = where(x>=0, 1/(1+e), e/(1+e))
            e = jnp.exp(-jnp.abs(x))
            one_plus_e = 1.0 + e
            if approx_recip:
                r = pl.reciprocal(one_plus_e, approx=True)   # EUP slot (~free)
            else:
                r = 1.0 / one_plus_e
            p = jnp.where(x >= 0.0, r, e * r)
            bce = jnp.maximum(x, 0.0) - x * t + jnp.log(one_plus_e)
            td = jnp.trunc(t)   # reference casts targets to int64 (truncation)

            if masked:
                m = valid.astype(jnp.float32)
                bce = bce * m
                p = p * m
                td = td * m     # explicit, even though t was already zeroed

            return psum(bce), psum(p * td), psum(p), psum(td)

        def run(masked):
            if n_chunks == 1:
                s = chunk_stats(0, masked)
            else:
                def body(ci, acc):
                    s_ci = chunk_stats(ci, masked)
                    return tuple(a + b for a, b in zip(acc, s_ci))
                zero = jnp.zeros((_SUBLANES, _LANES), jnp.float32)
                # Rolled loop on purpose: bounds VMEM live ranges of the big
                # per-chunk temporaries even at large tile_rows.
                s = lax.fori_loop(0, n_chunks, body, (zero, zero, zero, zero))
            out_ref[0] += s[0]   # sum of BCE terms
            out_ref[1] += s[1]   # sum(p * t)
            out_ref[2] += s[2]   # sum(p)
            out_ref[3] += s[3]   # sum(t)

        @pl.when(is_full)
        def _():
            run(masked=False)

        @pl.when(jnp.logical_not(is_full))
        def _():
            run(masked=True)

    return kernel


def _leading_axis_semantics():
    # Only CORE_PARALLEL actually splits a grid axis across v7x's 2 TensorCores;
    # plain PARALLEL is a scheduling hint. Fall back safely on other chips.
    try:
        kind = jax.devices()[0].device_kind.lower()
    except Exception:
        kind = ""
    return pltpu.CORE_PARALLEL if "v7" in kind else pltpu.PARALLEL


@functools.partial(jax.jit, static_argnames=("tile_rows", "approx_recip"))
def dice_bce_loss(inputs, targets, tile_rows=4096, approx_recip=True):
    n = inputs.size
    assert targets.size == n

    # Zero-copy (rows,128) view whenever possible; otherwise pad up to 8*128.
    # TODO(synk): a fully pad-free path for numel % 128 != 0 would need 1-D blocks
    # with an in-kernel reshape; unaligned inputs currently pay one pad copy.
    if n % _LANES == 0 and n >= _MIN_TILE:
        padded_n = n
    else:
        padded_n = ((n + _MIN_TILE - 1) // _MIN_TILE) * _MIN_TILE
    rows = padded_n // _LANES

    # Streaming block: as large as practical (amortizes per-grid-step overhead),
    # multiple of 8 sublanes, and multiple of the in-kernel chunk when chunked.
    tr = max(_SUBLANES, min(int(tile_rows), rows))
    tr -= tr % _SUBLANES
    if tr > _CHUNK_ROWS:
        tr -= tr % _CHUNK_ROWS
        chunk_rows = _CHUNK_ROWS
    else:
        chunk_rows = tr

    num_blocks = pl.cdiv(rows, tr)
    bpc = pl.cdiv(num_blocks, 2)              # blocks per core slice

    def to2d(a):
        flat = a.reshape(-1)                  # free reshape, native dtype kept
        if padded_n != n:
            flat = jnp.pad(flat, (0, padded_n - n))
        return flat.reshape(rows, _LANES)

    x2 = to2d(inputs)
    t2 = to2d(targets)

    # Ghost blocks (odd block count split over 2 slices) are clamped onto an
    # in-bounds block; the in-kernel mask zeroes their contribution.
    in_map = lambda c, i: (jnp.minimum(c * bpc + i, num_blocks - 1), 0)

    in_block_bytes = tr * _LANES * max(x2.dtype.itemsize, t2.dtype.itemsize)
    vmem_limit = int(min(56 * 2**20, max(32 * 2**20, 6 * in_block_bytes + (4 << 20))))

    partials = pl.pallas_call(
        _make_kernel(n, tr, chunk_rows, bpc, bool(approx_recip)),
        out_shape=jax.ShapeDtypeStruct((2 * 4, _SUBLANES, _LANES), jnp.float32),
        grid_spec=pltpu.PrefetchScalarGridSpec(
            num_scalar_prefetch=0,
            grid=(2, bpc),
            in_specs=[
                pl.BlockSpec((tr, _LANES), in_map),
                pl.BlockSpec((tr, _LANES), in_map),
            ],
            out_specs=pl.BlockSpec((4, _SUBLANES, _LANES),
                                   lambda c, i: (c, 0, 0)),
        ),
        compiler_params=pltpu.CompilerParams(
            dimension_semantics=(_leading_axis_semantics(), pltpu.ARBITRARY),
            vmem_limit_bytes=vmem_limit,
        ),
    )(x2, t2)

    # Tiny epilogue: combine per-core (8,128) partials, then the scalar Dice/BCE
    # math exactly as the PyTorch reference.
    sums = jnp.sum(partials.reshape(2, 4, _SUBLANES, _LANES), axis=(0, 2, 3))
    s_bce, s_pt, s_p, s_t = sums[0], sums[1], sums[2], sums[3]
    n_el = jnp.float32(n)

    bce_mean = s_bce / n_el
    # Dice over 2 channels (foreground p/t, background (1-p)/(1-t)), summed over
    # batch+spatial, averaged over channels.  Like the reference there is no
    # smoothing constant (degenerate all-one/all-zero inputs divide by ~0).
    n0 = 2.0 * s_pt
    d0 = s_p + s_t
    n1 = 2.0 * (n_el - s_p - s_t + s_pt)
    d1 = 2.0 * n_el - s_p - s_t
    dice_score = 0.5 * (n0 / d0 + n1 / d1)
    return bce_mean + (1.0 - dice_score)


def _reference_loss(x, t):
    x = x.astype(jnp.float32)
    t = t.astype(jnp.float32)
    bce = jnp.mean(jnp.maximum(x, 0.0) - x * t + jnp.log1p(jnp.exp(-jnp.abs(x))))
    p = jax.nn.sigmoid(x)
    td = jnp.trunc(t)
    n0 = 2.0 * jnp.sum(p * td)
    d0 = jnp.sum(p) + jnp.sum(td)
    n1 = 2.0 * jnp.sum((1.0 - p) * (1.0 - td))
    d1 = jnp.sum(1.0 - p) + jnp.sum(1.0 - td)
    dice = 0.5 * (n0 / d0 + n1 / d1)
    return bce + (1.0 - dice)


if __name__ == "__main__":
    key = jax.random.PRNGKey(0)

    cases = [
        # (shape, tile_rows, approx_recip, atol)
        ((2, 1, 32, 32), 4096, True, 3e-3),    # aligned, single block, fast path
        ((2, 1, 32, 32), 4096, False, 5e-4),   # exact-reciprocal reference mode
        ((3, 1, 24, 32), 4096, True, 3e-3),    # zero-copy, partial trailing block (masked)
        ((2, 1, 17, 19), 4096, True, 3e-3),    # unaligned tiny -> pad + masked path
        ((4, 1, 64, 64), 16, True, 3e-3),      # multi-block accumulation, both core slices
        ((8, 1, 128, 128), 4096, True, 3e-3),  # multi-chunk in-kernel fori_loop
    ]

    for idx, (shape, tile_rows, approx, atol) in enumerate(cases):
        key, kx, kt = jax.random.split(key, 3)
        x = jax.random.normal(kx, shape, dtype=jnp.float32)
        t = jax.random.bernoulli(kt, 0.5, shape).astype(jnp.float32)

        loss = dice_bce_loss(x, t, tile_rows=tile_rows, approx_recip=approx)
        jax.block_until_ready(loss)

        ref = _reference_loss(x, t)
        err = abs(float(loss) - float(ref))
        assert err < atol, (idx, shape, float(loss), float(ref), err)

    print("KERNEL_OK")
</pallas_src>

<mosaic_0001>
module attributes {stable_mosaic.version = 11 : i64} {
  func.func @kernel(%arg0: i32, %arg1: i32, %arg2: memref<16x128xf32, #tpu.memory_space<vmem>>, %arg3: memref<16x128xf32, #tpu.memory_space<vmem>>, %arg4: memref<4x8x128xf32, #tpu.memory_space<vmem>>) attributes {dimension_semantics = [#tpu.dimension_semantics<parallel>, #tpu.dimension_semantics<arbitrary>], iteration_bounds = array<i64: 2, 1>, scalar_prefetch = 0 : i64, scratch_operands = 0 : i64, tpu.core_type = #tpu.core_type<tc>, window_params = [{transform_indices = @transform_0, window_bounds = array<i64: 16, 128>}, {transform_indices = @transform_1, window_bounds = array<i64: 16, 128>}, {transform_indices = @transform_2, window_bounds = array<i64: 4, 8, 128>}]} {
    %c0_i32 = arith.constant 0 : i32
    %0 = arith.cmpi eq, %arg1, %c0_i32 : i32
    %1 = arith.extui %0 : i1 to i32
    %c0_i32_0 = arith.constant 0 : i32
    %2 = arith.cmpi ne, %1, %c0_i32_0 : i32
    scf.if %2 {
      %cst = arith.constant 0.000000e+00 : f32
      %13 = vector.broadcast %cst : f32 to vector<4x8x128xf32>
      %c0 = arith.constant 0 : index
      %c0_5 = arith.constant 0 : index
      %c0_6 = arith.constant 0 : index
      %14 = vector.load %arg4[%c0, %c0_5, %c0_6] : memref<4x8x128xf32, #tpu.memory_space<vmem>>, vector<4x8x128xf32>
      tpu.vector_store %arg4[%c0, %c0_5, %c0_6], %13 {strides = array<i32>} : memref<4x8x128xf32, #tpu.memory_space<vmem>>, vector<4x8x128xf32>,
    } else {
    }
    %c1_i32 = arith.constant 1 : i32
    %3 = arith.muli %arg0, %c1_i32 : i32
    %4 = arith.addi %3, %arg1 : i32
    %c2048_i32 = arith.constant 2048 : i32
    %5 = arith.muli %4, %c2048_i32 : i32
    %c2048_i32_1 = arith.constant 2048 : i32
    %6 = arith.addi %5, %c2048_i32_1 : i32
    %c2048_i32_2 = arith.constant 2048 : i32
    %7 = arith.cmpi sle, %6, %c2048_i32_2 : i32
    %8 = arith.extui %7 : i1 to i32
    %c0_i32_3 = arith.constant 0 : i32
    %9 = arith.cmpi ne, %8, %c0_i32_3 : i32
    scf.if %9 {
      %c0 = arith.constant 0 : index
      %c0_5 = arith.constant 0 : index
      %13 = vector.load %arg2[%c0, %c0_5] : memref<16x128xf32, #tpu.memory_space<vmem>>, vector<16x128xf32>
      %c0_6 = arith.constant 0 : index
      %c0_7 = arith.constant 0 : index
      %14 = vector.load %arg3[%c0_6, %c0_7] : memref<16x128xf32, #tpu.memory_space<vmem>>, vector<16x128xf32>
      %15 = math.absf %13 : vector<16x128xf32>
      %cst = arith.constant 0.000000e+00 : f32
      %16 = vector.broadcast %cst : f32 to vector<16x128xf32>
      %17 = arith.subf %16, %15 : vector<16x128xf32>
      %18 = math.exp %17 : vector<16x128xf32>
      %cst_8 = arith.constant 1.000000e+00 : f32
      %19 = vector.broadcast %cst_8 : f32 to vector<16x128xf32>
      %20 = arith.addf %19, %18 : vector<16x128xf32>
      %21 = tpu.reciprocal %20 {approx = true} : vector<16x128xf32> -> vector<16x128xf32>
      %cst_9 = arith.constant 0.000000e+00 : f32
      %22 = vector.broadcast %cst_9 : f32 to vector<16x128xf32>
      %23 = arith.cmpf oge, %13, %22 : vector<16x128xf32>
      %24 = arith.mulf %18, %21 : vector<16x128xf32>
      %25 = arith.select %23, %21, %24 : vector<16x128xi1>, vector<16x128xf32>
      %cst_10 = arith.constant 0.000000e+00 : f32
      %26 = vector.broadcast %cst_10 : f32 to vector<16x128xf32>
      %27 = arith.maximumf %13, %26 : vector<16x128xf32>
      %28 = arith.mulf %13, %14 : vector<16x128xf32>
      %29 = arith.subf %27, %28 : vector<16x128xf32>
      %30 = math.log %20 : vector<16x128xf32>
      %31 = arith.addf %29, %30 : vector<16x128xf32>
      %cst_11 = arith.constant 0.000000e+00 : f32
      %32 = vector.broadcast %cst_11 : f32 to vector<16x128xf32>
      %33 = arith.cmpf olt, %14, %32 : vector<16x128xf32>
      %34 = math.ceil %14 : vector<16x128xf32>
      %35 = math.floor %14 : vector<16x128xf32>
      %36 = arith.select %33, %34, %35 : vector<16x128xi1>, vector<16x128xf32>
      %37 = vector.shape_cast %31 : vector<16x128xf32> to vector<2x8x128xf32>
      %cst_12 = arith.constant dense<0.000000e+00> : vector<8x128xf32>
      %38 = vector.multi_reduction <add>, %37, %cst_12 [0] : vector<2x8x128xf32> to vector<8x128xf32>
      %39 = arith.mulf %25, %36 : vector<16x128xf32>
      %40 = vector.shape_cast %39 : vector<16x128xf32> to vector<2x8x128xf32>
      %cst_13 = arith.constant dense<0.000000e+00> : vector<8x128xf32>
      %41 = vector.multi_reduction <add>, %40, %cst_13 [0] : vector<2x8x128xf32> to vector<8x128xf32>
      %42 = vector.shape_cast %25 : vector<16x128xf32> to vector<2x8x128xf32>
      %cst_14 = arith.constant dense<0.000000e+00> : vector<8x128xf32>
      %43 = vector.multi_reduction <add>, %42, %cst_14 [0] : vector<2x8x128xf32> to vector<8x128xf32>
      %44 = vector.shape_cast %36 : vector<16x128xf32> to vector<2x8x128xf32>
      %cst_15 = arith.constant dense<0.000000e+00> : vector<8x128xf32>
      %45 = vector.multi_reduction <add>, %44, %cst_15 [0] : vector<2x8x128xf32> to vector<8x128xf32>
      %c0_16 = arith.constant 0 : index
      %c0_17 = arith.constant 0 : index
      %c0_18 = arith.constant 0 : index
      %46 = vector.load %arg4[%c0_16, %c0_17, %c0_18] : memref<4x8x128xf32, #tpu.memory_space<vmem>>, vector<1x8x128xf32>
      %47 = vector.shape_cast %46 : vector<1x8x128xf32> to vector<8x128xf32>
      %48 = arith.addf %47, %38 : vector<8x128xf32>
      %c0_19 = arith.constant 0 : index
      %c0_20 = arith.constant 0 : index
      %c0_21 = arith.constant 0 : index
      %49 = vector.load %arg4[%c0_19, %c0_20, %c0_21] : memref<4x8x128xf32, #tpu.memory_space<vmem>>, vector<1x8x128xf32>
      %50 = vector.shape_cast %49 : vector<1x8x128xf32> to vector<8x128xf32>
      %51 = vector.shape_cast %48 : vector<8x128xf32> to vector<1x8x128xf32>
      tpu.vector_store %arg4[%c0_19, %c0_20, %c0_21], %51 {strides = array<i32>} : memref<4x8x128xf32, #tpu.memory_space<vmem>>, vector<1x8x128xf32>,
      %c1 = arith.constant 1 : index
      %c0_22 = arith.constant 0 : index
      %c0_23 = arith.constant 0 : index
      %52 = vector.load %arg4[%c1, %c0_22, %c0_23] : memref<4x8x128xf32, #tpu.memory_space<vmem>>, vector<1x8x128xf32>
      %53 = vector.shape_cast %52 : vector<1x8x128xf32> to vector<8x128xf32>
      %54 = arith.addf %53, %41 : vector<8x128xf32>
      %c1_24 = arith.constant 1 : index
      %c0_25 = arith.constant 0 : index
      %c0_26 = arith.constant 0 : index
      %55 = vector.load %arg4[%c1_24, %c0_25, %c0_26] : memref<4x8x128xf32, #tpu.memory_space<vmem>>, vector<1x8x128xf32>
      %56 = vector.shape_cast %55 : vector<1x8x128xf32> to vector<8x128xf32>
      %57 = vector.shape_cast %54 : vector<8x128xf32> to vector<1x8x128xf32>
      tpu.vector_store %arg4[%c1_24, %c0_25, %c0_26], %57 {strides = array<i32>} : memref<4x8x128xf32, #tpu.memory_space<vmem>>, vector<1x8x128xf32>,
      %c2 = arith.constant 2 : index
      %c0_27 = arith.constant 0 : index
      %c0_28 = arith.constant 0 : index
      %58 = vector.load %arg4[%c2, %c0_27, %c0_28] : memref<4x8x128xf32, #tpu.memory_space<vmem>>, vector<1x8x128xf32>
      %59 = vector.shape_cast %58 : vector<1x8x128xf32> to vector<8x128xf32>
      %60 = arith.addf %59, %43 : vector<8x128xf32>
      %c2_29 = arith.constant 2 : index
      %c0_30 = arith.constant 0 : index
      %c0_31 = arith.constant 0 : index
      %61 = vector.load %arg4[%c2_29, %c0_30, %c0_31] : memref<4x8x128xf32, #tpu.memory_space<vmem>>, vector<1x8x128xf32>
      %62 = vector.shape_cast %61 : vector<1x8x128xf32> to vector<8x128xf32>
      %63 = vector.shape_cast %60 : vector<8x128xf32> to vector<1x8x128xf32>
      tpu.vector_store %arg4[%c2_29, %c0_30, %c0_31], %63 {strides = array<i32>} : memref<4x8x128xf32, #tpu.memory_space<vmem>>, vector<1x8x128xf32>,
      %c3 = arith.constant 3 : index
      %c0_32 = arith.constant 0 : index
      %c0_33 = arith.constant 0 : index
      %64 = vector.load %arg4[%c3, %c0_32, %c0_33] : memref<4x8x128xf32, #tpu.memory_space<vmem>>, vector<1x8x128xf32>
      %65 = vector.shape_cast %64 : vector<1x8x128xf32> to vector<8x128xf32>
      %66 = arith.addf %65, %45 : vector<8x128xf32>
      %c3_34 = arith.constant 3 : index
      %c0_35 = arith.constant 0 : index
      %c0_36 = arith.constant 0 : index
      %67 = vector.load %arg4[%c3_34, %c0_35, %c0_36] : memref<4x8x128xf32, #tpu.memory_space<vmem>>, vector<1x8x128xf32>
      %68 = vector.shape_cast %67 : vector<1x8x128xf32> to vector<8x128xf32>
      %69 = vector.shape_cast %66 : vector<8x128xf32> to vector<1x8x128xf32>
      tpu.vector_store %arg4[%c3_34, %c0_35, %c0_36], %69 {strides = array<i32>} : memref<4x8x128xf32, #tpu.memory_space<vmem>>, vector<1x8x128xf32>,
    } else {
    }
    %true = arith.constant true
    %10 = arith.xori %7, %true : i1
    %11 = arith.extui %10 : i1 to i32
    %c0_i32_4 = arith.constant 0 : i32
    %12 = arith.cmpi ne, %11, %c0_i32_4 : i32
    scf.if %12 {
      %c0 = arith.constant 0 : index
      %c0_5 = arith.constant 0 : index
      %13 = vector.load %arg2[%c0, %c0_5] : memref<16x128xf32, #tpu.memory_space<vmem>>, vector<16x128xf32>
      %c0_6 = arith.constant 0 : index
      %c0_7 = arith.constant 0 : index
      %14 = vector.load %arg3[%c0_6, %c0_7] : memref<16x128xf32, #tpu.memory_space<vmem>>, vector<16x128xf32>
      %15 = tpu.iota {dimensions = array<i32: 0>} : vector<16x128xi32>
      %16 = tpu.iota {dimensions = array<i32: 1>} : vector<16x128xi32>
      %c0_i32_8 = arith.constant 0 : i32
      %17 = vector.broadcast %c0_i32_8 : i32 to vector<16x128xi32>
      %18 = arith.addi %17, %15 : vector<16x128xi32>
      %c128_i32 = arith.constant 128 : i32
      %19 = vector.broadcast %c128_i32 : i32 to vector<16x128xi32>
      %20 = arith.muli %18, %19 : vector<16x128xi32>
      %21 = vector.broadcast %5 : i32 to vector<16x128xi32>
      %22 = arith.addi %21, %20 : vector<16x128xi32>
      %23 = arith.addi %22, %16 : vector<16x128xi32>
      %c2048_i32_9 = arith.constant 2048 : i32
      %24 = vector.broadcast %c2048_i32_9 : i32 to vector<16x128xi32>
      %25 = arith.cmpi slt, %23, %24 : vector<16x128xi32>
      %cst = arith.constant 0.000000e+00 : f32
      %26 = vector.broadcast %cst : f32 to vector<16x128xf32>
      %27 = arith.select %25, %13, %26 : vector<16x128xi1>, vector<16x128xf32>
      %cst_10 = arith.constant 0.000000e+00 : f32
      %28 = vector.broadcast %cst_10 : f32 to vector<16x128xf32>
      %29 = arith.select %25, %14, %28 : vector<16x128xi1>, vector<16x128xf32>
      %30 = math.absf %27 : vector<16x128xf32>
      %cst_11 = arith.constant 0.000000e+00 : f32
      %31 = vector.broadcast %cst_11 : f32 to vector<16x128xf32>
      %32 = arith.subf %31, %30 : vector<16x128xf32>
      %33 = math.exp %32 : vector<16x128xf32>
      %cst_12 = arith.constant 1.000000e+00 : f32
      %34 = vector.broadcast %cst_12 : f32 to vector<16x128xf32>
      %35 = arith.addf %34, %33 : vector<16x128xf32>
      %36 = tpu.reciprocal %35 {approx = true} : vector<16x128xf32> -> vector<16x128xf32>
      %cst_13 = arith.constant 0.000000e+00 : f32
      %37 = vector.broadcast %cst_13 : f32 to vector<16x128xf32>
      %38 = arith.cmpf oge, %27, %37 : vector<16x128xf32>
      %39 = arith.mulf %33, %36 : vector<16x128xf32>
      %40 = arith.select %38, %36, %39 : vector<16x128xi1>, vector<16x128xf32>
      %cst_14 = arith.constant 0.000000e+00 : f32
      %41 = vector.broadcast %cst_14 : f32 to vector<16x128xf32>
      %42 = arith.maximumf %27, %41 : vector<16x128xf32>
      %43 = arith.mulf %27, %29 : vector<16x128xf32>
      %44 = arith.subf %42, %43 : vector<16x128xf32>
      %45 = math.log %35 : vector<16x128xf32>
      %46 = arith.addf %44, %45 : vector<16x128xf32>
      %cst_15 = arith.constant 0.000000e+00 : f32
      %47 = vector.broadcast %cst_15 : f32 to vector<16x128xf32>
      %48 = arith.cmpf olt, %29, %47 : vector<16x128xf32>
      %49 = math.ceil %29 : vector<16x128xf32>
      %50 = math.floor %29 : vector<16x128xf32>
      %51 = arith.select %48, %49, %50 : vector<16x128xi1>, vector<16x128xf32>
      %52 = arith.extui %25 : vector<16x128xi1> to vector<16x128xi32>
      %53 = arith.sitofp %52 : vector<16x128xi32> to vector<16x128xf32>
      %54 = arith.mulf %46, %53 : vector<16x128xf32>
      %55 = arith.mulf %40, %53 : vector<16x128xf32>
      %56 = arith.mulf %51, %53 : vector<16x128xf32>
      %57 = vector.shape_cast %54 : vector<16x128xf32> to vector<2x8x128xf32>
      %cst_16 = arith.constant dense<0.000000e+00> : vector<8x128xf32>
      %58 = vector.multi_reduction <add>, %57, %cst_16 [0] : vector<2x8x128xf32> to vector<8x128xf32>
      %59 = arith.mulf %55, %56 : vector<16x128xf32>
      %60 = vector.shape_cast %59 : vector<16x128xf32> to vector<2x8x128xf32>
      %cst_17 = arith.constant dense<0.000000e+00> : vector<8x128xf32>
      %61 = vector.multi_reduction <add>, %60, %cst_17 [0] : vector<2x8x128xf32> to vector<8x128xf32>
      %62 = vector.shape_cast %55 : vector<16x128xf32> to vector<2x8x128xf32>
      %cst_18 = arith.constant dense<0.000000e+00> : vector<8x128xf32>
      %63 = vector.multi_reduction <add>, %62, %cst_18 [0] : vector<2x8x128xf32> to vector<8x128xf32>
      %64 = vector.shape_cast %56 : vector<16x128xf32> to vector<2x8x128xf32>
      %cst_19 = arith.constant dense<0.000000e+00> : vector<8x128xf32>
      %65 = vector.multi_reduction <add>, %64, %cst_19 [0] : vector<2x8x128xf32> to vector<8x128xf32>
      %c0_20 = arith.constant 0 : index
      %c0_21 = arith.constant 0 : index
      %c0_22 = arith.constant 0 : index
      %66 = vector.load %arg4[%c0_20, %c0_21, %c0_22] : memref<4x8x128xf32, #tpu.memory_space<vmem>>, vector<1x8x128xf32>
      %67 = vector.shape_cast %66 : vector<1x8x128xf32> to vector<8x128xf32>
      %68 = arith.addf %67, %58 : vector<8x128xf32>
      %c0_23 = arith.constant 0 : index
      %c0_24 = arith.constant 0 : index
      %c0_25 = arith.constant 0 : index
      %69 = vector.load %arg4[%c0_23, %c0_24, %c0_25] : memref<4x8x128xf32, #tpu.memory_space<vmem>>, vector<1x8x128xf32>
      %70 = vector.shape_cast %69 : vector<1x8x128xf32> to vector<8x128xf32>
      %71 = vector.shape_cast %68 : vector<8x128xf32> to vector<1x8x128xf32>
      tpu.vector_store %arg4[%c0_23, %c0_24, %c0_25], %71 {strides = array<i32>} : memref<4x8x128xf32, #tpu.memory_space<vmem>>, vector<1x8x128xf32>,
      %c1 = arith.constant 1 : index
      %c0_26 = arith.constant 0 : index
      %c0_27 = arith.constant 0 : index
      %72 = vector.load %arg4[%c1, %c0_26, %c0_27] : memref<4x8x128xf32, #tpu.memory_space<vmem>>, vector<1x8x128xf32>
      %73 = vector.shape_cast %72 : vector<1x8x128xf32> to vector<8x128xf32>
      %74 = arith.addf %73, %61 : vector<8x128xf32>
      %c1_28 = arith.constant 1 : index
      %c0_29 = arith.constant 0 : index
      %c0_30 = arith.constant 0 : index
      %75 = vector.load %arg4[%c1_28, %c0_29, %c0_30] : memref<4x8x128xf32, #tpu.memory_space<vmem>>, vector<1x8x128xf32>
      %76 = vector.shape_cast %75 : vector<1x8x128xf32> to vector<8x128xf32>
      %77 = vector.shape_cast %74 : vector<8x128xf32> to vector<1x8x128xf32>
      tpu.vector_store %arg4[%c1_28, %c0_29, %c0_30], %77 {strides = array<i32>} : memref<4x8x128xf32, #tpu.memory_space<vmem>>, vector<1x8x128xf32>,
      %c2 = arith.constant 2 : index
      %c0_31 = arith.constant 0 : index
      %c0_32 = arith.constant 0 : index
      %78 = vector.load %arg4[%c2, %c0_31, %c0_32] : memref<4x8x128xf32, #tpu.memory_space<vmem>>, vector<1x8x128xf32>
      %79 = vector.shape_cast %78 : vector<1x8x128xf32> to vector<8x128xf32>
      %80 = arith.addf %79, %63 : vector<8x128xf32>
      %c2_33 = arith.constant 2 : index
      %c0_34 = arith.constant 0 : index
      %c0_35 = arith.constant 0 : index
      %81 = vector.load %arg4[%c2_33, %c0_34, %c0_35] : memref<4x8x128xf32, #tpu.memory_space<vmem>>, vector<1x8x128xf32>
      %82 = vector.shape_cast %81 : vector<1x8x128xf32> to vector<8x128xf32>
      %83 = vector.shape_cast %80 : vector<8x128xf32> to vector<1x8x128xf32>
      tpu.vector_store %arg4[%c2_33, %c0_34, %c0_35], %83 {strides = array<i32>} : memref<4x8x128xf32, #tpu.memory_space<vmem>>, vector<1x8x128xf32>,
      %c3 = arith.constant 3 : index
      %c0_36 = arith.constant 0 : index
      %c0_37 = arith.constant 0 : index
      %84 = vector.load %arg4[%c3, %c0_36, %c0_37] : memref<4x8x128xf32, #tpu.memory_space<vmem>>, vector<1x8x128xf32>
      %85 = vector.shape_cast %84 : vector<1x8x128xf32> to vector<8x128xf32>
      %86 = arith.addf %85, %65 : vector<8x128xf32>
      %c3_38 = arith.constant 3 : index
      %c0_39 = arith.constant 0 : index
      %c0_40 = arith.constant 0 : index
      %87 = vector.load %arg4[%c3_38, %c0_39, %c0_40] : memref<4x8x128xf32, #tpu.memory_space<vmem>>, vector<1x8x128xf32>
      %88 = vector.shape_cast %87 : vector<1x8x128xf32> to vector<8x128xf32>
      %89 = vector.shape_cast %86 : vector<8x128xf32> to vector<1x8x128xf32>
      tpu.vector_store %arg4[%c3_38, %c0_39, %c0_40], %89 {strides = array<i32>} : memref<4x8x128xf32, #tpu.memory_space<vmem>>, vector<1x8x128xf32>,
    } else {
    }
    return
  }
  func.func @transform_0(%arg0: i32, %arg1: i32) -> (i32, i32) {
    %c1_i32 = arith.constant 1 : i32
    %0 = arith.muli %arg0, %c1_i32 : i32
    %1 = arith.addi %0, %arg1 : i32
    %c0_i32 = arith.constant 0 : i32
    %2 = arith.minsi %1, %c0_i32 : i32
    %c0_i32_0 = arith.constant 0 : i32
    %c0_i32_1 = arith.constant 0 : i32
    return %2, %c0_i32_0 : i32, i32
  }
  func.func @transform_1(%arg0: i32, %arg1: i32) -> (i32, i32) {
    %c1_i32 = arith.constant 1 : i32
    %0 = arith.muli %arg0, %c1_i32 : i32
    %1 = arith.addi %0, %arg1 : i32
    %c0_i32 = arith.constant 0 : i32
    %2 = arith.minsi %1, %c0_i32 : i32
    %c0_i32_0 = arith.constant 0 : i32
    %c0_i32_1 = arith.constant 0 : i32
    return %2, %c0_i32_0 : i32, i32
  }
  func.func @transform_2(%arg0: i32, %arg1: i32) -> (i32, i32, i32) {
    %c0_i32 = arith.constant 0 : i32
    %c0_i32_0 = arith.constant 0 : i32
    %c0_i32_1 = arith.constant 0 : i32
    return %arg0, %c0_i32, %c0_i32_0 : i32, i32, i32
  }
}

</mosaic_0001>

<bundles_post_ra>
// kernel: dice_bce_loss.1
= control target key start
LH: loop header
LB: loop body
LE: loop exit
PB: predicated region body
PF: predicated region fallthrough
CT: control target
= control target key end

     0   :  { %s594_s9 = smov 0   ;;  %s596_s10 = smov 0   ;;  %s686_s0 = inlined_call_operand.vmem [shape: f32[16,128], index: 0, kind: input, shape index: {}]   ;;  %s687_s1 = inlined_call_operand.vmem [shape: f32[16,128], index: 1, kind: input, shape index: {}]   ;;  %s688_s2 = inlined_call_operand.vmem [shape: f32[8,8,128], index: 2, kind: output, shape index: {}]  }
   0x1   :  { %s598_s11 = smov 0  }
   0x2 LB: > { %s24_s12 = sadd.s32 1, %s571_s10  ;;  %p477_p0 = scmp.ge.s32.totalorder %s575_s11, 1  ;;  %s575_s11 = sphi %s598_s11, %s12_s11   ;;  %s571_s10 = sphi %s596_s10, %s690_s10   ;;  %s567_s9 = sphi %s594_s9, %s689_s9  }
   0x3   : > { %p26_p1 = scmp.ge.s32.totalorder %s24_s12, 2  ;;  %p160_p2 = scmp.lt.s32.totalorder %s575_s11, 3 }
   0x5   : > { %s692_s12 = smov (%p26_p1, %s24_s12), 0  ;;  %p161_p3 = pnand %p477_p0, %p160_p2 }
   0x6   : > { %p194_p4 = scmp.lt.s32.totalorder (!%p161_p3), %s567_s9, 0  ;;  %s482_s13 = sshll.u32 (!%p161_p3), %s567_s9, 2  ;;  %v577_v0 = vmov (!%p161_p3), 0.0  }
   0x7   : > { %164 = sbr.rel (%p161_p3) target bundleno = 122 (0x7a), region = 28  ;;  %p218_p5 = scmp.lt.s32.totalorder (!%p161_p3), %s482_s13, 7 }
   0x8   : > { %s484_s14 = sshll.u32 (!%p161_p3), %s567_s9, 11 }
   0x9   : > { %s620_s17 = sadd.s32 (!%p161_p3), 2048, %s484_s14 }
   0xa   : > { %p485_p7 = scmp.gt.s32.totalorder (!%p161_p3), %s620_s17, 2048 }
   0xe   : > { %s195_s15 = scalar_select %p194_p4, %s567_s9, 0 }
   0xf   : > { %s694_s13 = smov (!%p218_p5, %s482_s13), 7  ;;  %237 = sbr.rel (%p485_p7) target bundleno = 65 (0x41), region = 36 }
  0x10   : > { %s478_s16 = sshll.u32 %s195_s15, 1  ;;  %s483_s18 = sshll.u32 %s694_s13, 3 }
  0x11   : > { %p197_p6 = scmp.lt.s32.totalorder %s478_s16, 1  ;;  %s625_s21 = scalar_lea.vmem %s688_s2, %s483_s18 }
  0x12   : > { %227 = vst [vmem:[%s625_s21] sm:$0xff] %v577_v0  ;;  %228 = vst [vmem:[%s625_s21 + $0x8] sm:$0xff] %v577_v0 }
  0x13   : > { %s696_s16 = smov (!%p197_p6, %s478_s16), 1  ;;  %229 = vst [vmem:[%s625_s21 + $0x10] sm:$0xff] %v577_v0  ;;  %230 = vst [vmem:[%s625_s21 + $0x18] sm:$0xff] %v577_v0 }
  0x14   : > { %s479_s22 = sshll.u32 %s696_s16, 3 }
  0x15   : > { %s633_s25 = scalar_lea.vmem %s686_s0, %s479_s22  ;;  %s638_s28 = scalar_lea.vmem %s687_s1, %s479_s22 }
  0x16   : > { %v238_v1 = vld [vmem:[%s633_s25] sm:$0xff]  ;;  %v239_v2 = vld [vmem:[%s633_s25 + $0x8] sm:$0xff] }
  0x17   : > { %v242_v3 = vand.u32 2147483647, %v238_v1  ;;  %v243_v4 = vand.u32 2147483647, %v239_v2  ;;  %v240_v13 = vld [vmem:[%s638_s28] sm:$0xff]  ;;  %v241_v14 = vld [vmem:[%s638_s28 + $0x8] sm:$0xff] }
  0x18   : > { %v260_v15 = vmax.f32 %v238_v1, 0.0  ;;  %v262_v16 = vmul.f32 %v240_v13, %v238_v1  ;;  %v261_v17 = vmax.f32 %v239_v2, 0.0  ;;  %v263_v18 = vmul.f32 %v241_v14, %v239_v2 }
  0x19   : > { %v244_v5 = vsub.f32 0.0, %v242_v3  ;;  %v245_v6 = vsub.f32 0.0, %v243_v4  ;;  %vm254_vm0 = vcmp.ge.f32.partialorder %v238_v1, 0.0  ;;  %v274_v27 = vceil.f32 %v240_v13  ;;  %v286_v35 = vld [vmem:[%s625_s21] sm:$0xff]  ;;  %v486_v45 = vld [vmem:[%s625_s21 + $0x8] sm:$0xff] }
  0x1a   : > { %v264_v21 = vsub.f32 %v260_v15, %v262_v16  ;;  %v265_v23 = vsub.f32 %v261_v17, %v263_v18  ;;  %v275_v28 = vceil.f32 %v241_v14  ;;  %v276_v29 = vfloor.f32 %v240_v13  ;;  %v488_v48 = vld [vmem:[%s625_s21 + $0x10] sm:$0xff]  ;;  %v490_v51 = vld [vmem:[%s625_s21 + $0x18] sm:$0xff] }
  0x1b   : > { %v246_v7 = vmul.f32 1.442695, %v244_v5  ;;  %v248_v8 = vmul.f32 1.442695, %v245_v6  ;;  %v277_v33 = vfloor.f32 %v241_v14  ;;  %vm255_vm1 = vcmp.ge.f32.partialorder %v239_v2, 0.0 }
  0x1c   : > { %vm272_vm2 = vcmp.lt.f32.partialorder %v240_v13, 0.0  ;;  %vm273_vm3 = vcmp.lt.f32.partialorder %v241_v14, 0.0 }
  0x1d   : > { %529 = vpow2.f32 %v246_v7  ;;  %v278_v39 = vsel %vm272_vm2, %v274_v27, %v276_v29  ;;  %v279_v40 = vsel %vm273_vm3, %v275_v28, %v277_v33 }
  0x1e   : > { %531 = vpow2.f32 %v248_v8  ;;  %v285_v50 = vadd.f32 %v279_v40, %v278_v39 }
  0x20   : > { %v299_v52 = vadd.f32 %v490_v51, %v285_v50 }
  0x22   : > { %491 = vst [vmem:[%s625_s21 + $0x18] sm:$0xff] %v299_v52 }
  0x27   : > { %v530_v9 = vpop.eup %529 }
  0x28   : > { %v532_v10 = vpop.eup %531  ;;  %v250_v11 = vadd.f32 1.0, %v530_v9 }
  0x29   : > { %v251_v12 = vadd.f32 1.0, %v532_v10 }
  0x2a   : > { %533 = vrcp.f32 %v250_v11 }
  0x2b   : > { %535 = vrcp.f32 %v251_v12 }
  0x2c   : > { %537 = vlog2.f32 %v250_v11 }
  0x2d   : > { %539 = vlog2.f32 %v251_v12 }
  0x34   : > { %v534_v19 = vpop.eup %533 }
  0x35   : > { %v536_v20 = vpop.eup %535  ;;  %v256_v31 = vmul.f32 %v534_v19, %v530_v9 }
  0x36   : > { %v538_v22 = vpop.eup %537  ;;  %v257_v32 = vmul.f32 %v536_v20, %v532_v10 }
  0x37   : > { %v540_v24 = vpop.eup %539  ;;  %v267_v25 = vmul.f32 0.6931472, %v538_v22  ;;  %v258_v37 = vsel %vm254_vm0, %v534_v19, %v256_v31 }
  0x38   : > { %v269_v26 = vmul.f32 0.6931472, %v540_v24  ;;  %v259_v38 = vsel %vm255_vm1, %v536_v20, %v257_v32  ;;  %v281_v42 = vmul.f32 %v278_v39, %v258_v37 }
  0x39   : > { %v270_v30 = vadd.f32 %v267_v25, %v264_v21  ;;  %v282_v43 = vmul.f32 %v279_v40, %v259_v38  ;;  %v284_v47 = vadd.f32 %v259_v38, %v258_v37 }
  0x3a   : > { %v271_v34 = vadd.f32 %v269_v26, %v265_v23 }
  0x3b   : > { %v283_v44 = vadd.f32 %v282_v43, %v281_v42  ;;  %v295_v49 = vadd.f32 %v488_v48, %v284_v47 }
  0x3c   : > { %v280_v36 = vadd.f32 %v271_v34, %v270_v30 }
  0x3d   : > { %v291_v46 = vadd.f32 %v486_v45, %v283_v44  ;;  %489 = vst [vmem:[%s625_s21 + $0x10] sm:$0xff] %v295_v49 }
  0x3e   : > { %v287_v41 = vadd.f32 %v286_v35, %v280_v36 }
  0x3f   : > { %487 = vst [vmem:[%s625_s21 + $0x8] sm:$0xff] %v291_v46 }
  0x40   : > { %288 = vst [vmem:[%s625_s21] sm:$0xff] %v287_v41 }
  0x41 PF: > { %p492_p8 = scmp.le.s32.totalorder %s620_s17, 2048 }
  0x42   : > { %v309_v53 = vlaneseq (!%p492_p8)  ;;  %v316_v55 = vstv (!%p492_p8), %s484_s14  ;;  %v305_v61 = vld [vmem:[%s633_s25] sm:$0xff] (!%p492_p8)  ;;  %v306_v0 = vld [vmem:[%s633_s25 + $0x8] sm:$0xff] (!%p492_p8)  ;;  %v578_v25 = vmov (!%p492_p8), 0.0  }
  0x43   : > { %304 = sbr.rel (%p492_p8) target bundleno = 122 (0x7a), region = 40  ;;  %v307_v13 = vld [vmem:[%s638_s28] sm:$0xff] (!%p492_p8)  ;;  %v308_v15 = vld [vmem:[%s638_s28 + $0x8] sm:$0xff] (!%p492_p8) }
  0x44   : > { %v310_v54 = vshrl.u32 (!%p492_p8), %v309_v53, 7  ;;  %v313_v57 = vand.u32 (!%p492_p8), 127, %v309_v53 }
  0x46   : > { %v311_v56 = vadd.s32 (!%p492_p8), 8, %v310_v54  ;;  %v314_v58 = vmul.u32 (!%p492_p8), 128, %v310_v54 }
  0x47   : > { %v381_v47 = vld [vmem:[%s625_s21] sm:$0xff] (!%p492_p8) }
  0x48   : > { %v315_v59 = vmul.u32 (!%p492_p8), 128, %v311_v56  ;;  %v317_v60 = vadd.s32 (!%p492_p8), %v316_v55, %v314_v58 }
  0x4a   : > { %v318_v62 = vadd.s32 %v316_v55, %v315_v59  ;;  %v319_v63 = vadd.s32 %v317_v60, %v313_v57  ;;  %v497_v60 = vld [vmem:[%s625_s21 + $0x10] sm:$0xff] }
  0x4c   : > { %v320_v1 = vadd.s32 %v318_v62, %v313_v57  ;;  %vm321_vm4 = vcmp.lt.s32.totalorder %v319_v63, 2048  ;;  %v495_v57 = vld [vmem:[%s625_s21 + $0x8] sm:$0xff]  ;;  %v499_v63 = vld [vmem:[%s625_s21 + $0x18] sm:$0xff] }
  0x4d   : > { %v323_v2 = vsel %vm321_vm4, %v305_v61, 0.0  ;;  %v325_v16 = vsel %vm321_vm4, %v307_v13, 0.0  ;;  %v493_v26 = vsel %vm321_vm4, 1.0, %v578_v25 }
  0x4e   : > { %vm322_vm5 = vcmp.lt.s32.totalorder %v320_v1, 2048  ;;  %v327_v3 = vand.u32 2147483647, %v323_v2  ;;  %v345_v18 = vmax.f32 %v323_v2, 0.0  ;;  %v347_v19 = vmul.f32 %v325_v16, %v323_v2 }
  0x4f   : > { %v324_v4 = vsel %vm322_vm5, %v306_v0, 0.0  ;;  %v326_v17 = vsel %vm322_vm5, %v308_v15, 0.0  ;;  %vm339_vm6 = vcmp.ge.f32.partialorder %v323_v2, 0.0  ;;  %vm357_vm7 = vcmp.lt.f32.partialorder %v325_v16, 0.0 }
  0x50   : > { %v328_v5 = vand.u32 2147483647, %v324_v4  ;;  %v329_v6 = vsub.f32 0.0, %v327_v3  ;;  %v346_v20 = vmax.f32 %v324_v4, 0.0  ;;  %v348_v21 = vmul.f32 %v326_v17, %v324_v4 }
  0x51   : > { %v349_v23 = vsub.f32 %v345_v18, %v347_v19  ;;  %v359_v30 = vceil.f32 %v325_v16  ;;  %v361_v31 = vfloor.f32 %v325_v16  ;;  %v360_v35 = vceil.f32 %v326_v17 }
  0x52   : > { %v330_v7 = vsub.f32 0.0, %v328_v5  ;;  %v331_v8 = vmul.f32 1.442695, %v329_v6  ;;  %v350_v28 = vsub.f32 %v346_v20, %v348_v21  ;;  %v362_v36 = vfloor.f32 %v326_v17 }
  0x53   : > { %vm340_vm8 = vcmp.ge.f32.partialorder %v324_v4, 0.0  ;;  %vm358_vm9 = vcmp.lt.f32.partialorder %v326_v17, 0.0  ;;  %v494_v39 = vsel %vm322_vm5, 1.0, %v578_v25  ;;  %v363_v42 = vsel %vm357_vm7, %v359_v30, %v361_v31 }
  0x54   : > { %541 = vpow2.f32 %v331_v8  ;;  %v333_v9 = vmul.f32 1.442695, %v330_v7  ;;  %v364_v45 = vsel %vm358_vm9, %v360_v35, %v362_v36  ;;  %v373_v48 = vmul.f32 %v493_v26, %v363_v42 }
  0x55   : > { %v374_v52 = vmul.f32 %v494_v39, %v364_v45 }
  0x56   : > { %543 = vpow2.f32 %v333_v9 }
  0x57   : > { %v380_v62 = vadd.f32 %v374_v52, %v373_v48 }
  0x59   : > { %v394_v0 = vadd.f32 %v499_v63, %v380_v62 }
  0x5b   : > { %500 = vst [vmem:[%s625_s21 + $0x18] sm:$0xff] %v394_v0 }
  0x5e   : > { %v542_v10 = vpop.eup %541 }
  0x5f   : > { %v335_v11 = vadd.f32 1.0, %v542_v10 }
  0x60   : > { %v544_v12 = vpop.eup %543 }
  0x61   : > { %v336_v14 = vadd.f32 1.0, %v544_v12  ;;  %545 = vrcp.f32 %v335_v11 }
  0x62   : > { %547 = vlog2.f32 %v335_v11 }
  0x63   : > { %549 = vrcp.f32 %v336_v14 }
  0x64   : > { %551 = vlog2.f32 %v336_v14 }
  0x6b   : > { %v546_v22 = vpop.eup %545 }
  0x6c   : > { %v548_v24 = vpop.eup %547  ;;  %v341_v33 = vmul.f32 %v546_v22, %v542_v10 }
  0x6d   : > { %v550_v27 = vpop.eup %549  ;;  %v352_v29 = vmul.f32 0.6931472, %v548_v24 }
  0x6e   : > { %v552_v32 = vpop.eup %551  ;;  %v342_v34 = vmul.f32 %v550_v27, %v544_v12  ;;  %v343_v43 = vsel %vm339_vm6, %v546_v22, %v341_v33 }
  0x6f   : > { %v354_v37 = vmul.f32 0.6931472, %v552_v32  ;;  %v355_v38 = vadd.f32 %v352_v29, %v349_v23  ;;  %v371_v50 = vmul.f32 %v493_v26, %v343_v43 }
  0x70   : > { %v344_v44 = vsel %vm340_vm8, %v550_v27, %v342_v34 }
  0x71   : > { %v356_v40 = vadd.f32 %v354_v37, %v350_v28  ;;  %v369_v41 = vmul.f32 %v493_v26, %v355_v38  ;;  %v372_v51 = vmul.f32 %v494_v39, %v344_v44  ;;  %v376_v54 = vmul.f32 %v373_v48, %v371_v50 }
  0x73   : > { %v370_v46 = vmul.f32 %v494_v39, %v356_v40  ;;  %v377_v55 = vmul.f32 %v374_v52, %v372_v51  ;;  %v379_v59 = vadd.f32 %v372_v51, %v371_v50 }
  0x75   : > { %v375_v49 = vadd.f32 %v370_v46, %v369_v41  ;;  %v378_v56 = vadd.f32 %v377_v55, %v376_v54  ;;  %v390_v61 = vadd.f32 %v497_v60, %v379_v59 }
  0x77   : > { %v382_v53 = vadd.f32 %v381_v47, %v375_v49  ;;  %v386_v58 = vadd.f32 %v495_v57, %v378_v56  ;;  %498 = vst [vmem:[%s625_s21 + $0x10] sm:$0xff] %v390_v61 }
  0x79   : > { %383 = vst [vmem:[%s625_s21] sm:$0xff] %v382_v53  ;;  %496 = vst [vmem:[%s625_s21 + $0x8] sm:$0xff] %v386_v58 }
  0x7a PF: > { %s12_s11 = sadd.s32 1, %s575_s11   ;;  %s689_s9 = smov %s571_s10 }
  0x7b   : > { %p9_p9 = scmp.ge.s32.totalorder %s12_s11, 4   ;;  %s690_s10 = smov %s692_s12 }
  0x7d   :  { %11 = sbr.rel (!%p9_p9) target bundleno = 2 (0x2), region = 79 }

</bundles_post_ra>
